<compile_context>
chip_gen: v6e
topology: v6e:2x2x1
jax: 0.10.0
libtpu: 0.0.40
codegen_flags: <defaults>
</compile_context>

<pallas_src>
import functools

import jax
import jax.numpy as jnp
from jax.experimental import pallas as pl
from jax.experimental.pallas import tpu as pltpu


def _round_up(n: int, m: int) -> int:
    return ((n + m - 1) // m) * m


def _pick_block_b(batch: int, max_block: int = 256) -> int:
    """Adaptive batch tile: multiple of 8 (sublane tile), no over-padding of
    tiny batches, >= 2 grid steps for larger batches (v7x megacore), capped
    at 256 rows (fills the MXU, amortizes per-grid-step overhead)."""
    bb = _round_up(max(batch, 1), 8)
    if batch > 16:
        bb = min(bb, _round_up((batch + 1) // 2, 16))
    return max(8, min(bb, max_block))


def encoder_kernel(x_ref, w1_ref, b1_ref, w2_ref, b2_ref, out_ref):
    # fc1: bf16 MXU matmul (f32 accumulation); bias + ReLU stay f32 on the VPU.
    x = x_ref[...].astype(jnp.bfloat16)
    h = jnp.dot(x, w1_ref[...], preferred_element_type=jnp.float32)
    h = jnp.maximum(h + b1_ref[...], 0.0)

    # Fused fc_mu / fc_logvar: one matmul over the concatenated (padded)
    # output axis; f32 bias add; lane-dense 128-wide store.
    y = jnp.dot(h.astype(jnp.bfloat16), w2_ref[...],
                preferred_element_type=jnp.float32)
    out_ref[...] = (y + b2_ref[...]).astype(out_ref.dtype)


def prepare_encoder_params(w1, b1, wmu, bmu, wlv, blv):
    """One-time parameter prep, hoisted out of the per-call jit path.

    * fc_mu / fc_logvar fused into a single [hidden, 2*latent] matmul,
    * hidden (400->512) and fused-output (40->128) axes zero-padded to lane
      multiples so all kernel loads/stores are lane-dense,
    * matmul operands cast to bf16 (biases stay f32 for the epilogue).
    The input dim (784) is NOT padded; the kernel block uses the full dim.
    """
    d_in, hidden = w1.shape
    latent = int(wmu.shape[1])
    hid_p = _round_up(hidden, 128)         # 400 -> 512
    out_p = _round_up(2 * latent, 128)     # 40  -> 128

    f32, bf16 = jnp.float32, jnp.bfloat16
    w1_p = jnp.zeros((d_in, hid_p), bf16).at[:, :hidden].set(w1.astype(bf16))
    b1_p = jnp.zeros((1, hid_p), f32).at[:, :hidden].set(
        b1.reshape(1, hidden).astype(f32))

    w2 = jnp.concatenate([wmu, wlv], axis=1)                      # [H, 2*latent]
    b2 = jnp.concatenate([bmu.reshape(1, -1), blv.reshape(1, -1)], axis=1)
    w2_p = jnp.zeros((hid_p, out_p), bf16).at[:hidden, :2 * latent].set(
        w2.astype(bf16))
    b2_p = jnp.zeros((1, out_p), f32).at[:, :2 * latent].set(b2.astype(f32))

    return w1_p, b1_p, w2_p, b2_p, latent


@functools.partial(jax.jit, static_argnames=("latent", "block_b"))
def _encoder_call(x, w1_p, b1_p, w2_p, b2_p, *, latent, block_b):
    B, d_in = x.shape
    hid_p = w1_p.shape[1]
    out_p = w2_p.shape[1]

    grid = (pl.cdiv(B, block_b),)
    const2 = lambda i: (0, 0)   # weights/biases resident across batch tiles

    flops = 2 * B * (d_in * hid_p + hid_p * out_p)
    bytes_accessed = (x.size * x.dtype.itemsize
                      + w1_p.size * 2 + w2_p.size * 2
                      + b1_p.size * 4 + b2_p.size * 4
                      + B * out_p * 4)

    out = pl.pallas_call(
        encoder_kernel,
        out_shape=jax.ShapeDtypeStruct((B, out_p), jnp.float32),
        grid_spec=pltpu.PrefetchScalarGridSpec(
            num_scalar_prefetch=0,
            grid=grid,
            in_specs=[
                pl.BlockSpec((block_b, d_in), lambda i: (i, 0)),  # x tile (f32)
                pl.BlockSpec((d_in, hid_p), const2),              # w1 (resident)
                pl.BlockSpec((1, hid_p), const2),                 # b1 (resident)
                pl.BlockSpec((hid_p, out_p), const2),             # fused w2
                pl.BlockSpec((1, out_p), const2),                 # fused b2
            ],
            out_specs=pl.BlockSpec((block_b, out_p), lambda i: (i, 0)),
        ),
        compiler_params=pltpu.CompilerParams(
            dimension_semantics=("parallel",),   # v7x: shard batch over 2 TCs
        ),
        cost_estimate=pl.CostEstimate(
            flops=flops, transcendentals=0, bytes_accessed=bytes_accessed),
    )(x, w1_p, b1_p, w2_p, b2_p)

    mu = out[:, :latent]
    logvar = out[:, latent:2 * latent]
    return mu, logvar


def encoder_forward(x, prepared_params, *, block_b=None):
    """x: [B, input_dim] f32; prepared_params from prepare_encoder_params()."""
    w1_p, b1_p, w2_p, b2_p, latent = prepared_params
    if block_b is None:
        block_b = _pick_block_b(int(x.shape[0]))
    return _encoder_call(x, w1_p, b1_p, w2_p, b2_p,
                         latent=latent, block_b=block_b)


def make_params(key, input_dim=784, hidden_dim=400, latent_dim=20):
    """Deterministic synthetic parameters (PyTorch-like uniform fan-in init)."""
    ks = jax.random.split(key, 6)

    def linear(kw, kb, fan_in, fan_out):
        bound = 1.0 / jnp.sqrt(fan_in)
        # stored already transposed: [fan_in, fan_out]
        w = jax.random.uniform(kw, (fan_in, fan_out), jnp.float32, -bound, bound)
        b = jax.random.uniform(kb, (1, fan_out), jnp.float32, -bound, bound)
        return w, b

    w1, b1 = linear(ks[0], ks[1], input_dim, hidden_dim)
    wmu, bmu = linear(ks[2], ks[3], hidden_dim, latent_dim)
    wlv, blv = linear(ks[4], ks[5], hidden_dim, latent_dim)
    return w1, b1, wmu, bmu, wlv, blv


if __name__ == "__main__":
    input_dim, hidden_dim, latent_dim = 784, 400, 20

    key = jax.random.PRNGKey(0)
    kx, kx2, kp = jax.random.split(key, 3)
    raw = make_params(kp, input_dim, hidden_dim, latent_dim)
    prepared = prepare_encoder_params(*raw)   # one-time prep (padded + bf16)

    w1, b1, wmu, bmu, wlv, blv = raw

    def ref_forward(xv):
        h_ref = jnp.maximum(xv @ w1 + b1, 0.0)
        return h_ref @ wmu + bmu, h_ref @ wlv + blv

    # --- small-batch check (B=8): single grid step, 8-row tile ---
    batch = 8
    x = jax.random.normal(kx, (batch, input_dim), dtype=jnp.float32)
    mu, logvar = encoder_forward(x, prepared)
    jax.block_until_ready((mu, logvar))

    mu_ref, lv_ref = ref_forward(x)
    assert mu.shape == (batch, latent_dim) and logvar.shape == (batch, latent_dim)
    assert bool(jnp.all(jnp.isfinite(mu))) and bool(jnp.all(jnp.isfinite(logvar)))
    # bf16 MXU operands with f32 accumulation -> loosened tolerances.
    assert jnp.allclose(mu, mu_ref, atol=5e-2, rtol=5e-2)
    assert jnp.allclose(logvar, lv_ref, atol=5e-2, rtol=5e-2)

    # --- larger-batch check (B=192): adaptive tile gives 2 grid steps
    #     (96-row tiles) so v7x can use both TensorCores ---
    batch2 = 192
    x2 = jax.random.normal(kx2, (batch2, input_dim), dtype=jnp.float32)
    mu2, logvar2 = encoder_forward(x2, prepared)
    jax.block_until_ready((mu2, logvar2))

    mu2_ref, lv2_ref = ref_forward(x2)
    assert mu2.shape == (batch2, latent_dim)
    assert jnp.allclose(mu2, mu2_ref, atol=5e-2, rtol=5e-2)
    assert jnp.allclose(logvar2, lv2_ref, atol=5e-2, rtol=5e-2)

    print("KERNEL_OK")
</pallas_src>

<mosaic_0001>
module attributes {stable_mosaic.version = 11 : i64} {
  func.func @encoder_kernel(%arg0: i32, %arg1: memref<8x784xf32, #tpu.memory_space<vmem>>, %arg2: memref<784x512xbf16, #tpu.memory_space<vmem>>, %arg3: memref<1x512xf32, #tpu.memory_space<vmem>>, %arg4: memref<512x128xbf16, #tpu.memory_space<vmem>>, %arg5: memref<1x128xf32, #tpu.memory_space<vmem>>, %arg6: memref<8x128xf32, #tpu.memory_space<vmem>>) attributes {dimension_semantics = [#tpu.dimension_semantics<parallel>], iteration_bounds = array<i64: 1>, scalar_prefetch = 0 : i64, scratch_operands = 0 : i64, tpu.core_type = #tpu.core_type<tc>, window_params = [{transform_indices = @transform_0, window_bounds = array<i64: 8, 784>}, {pipeline_mode = #tpu.pipeline_mode<synchronous>, transform_indices = @transform_1, window_bounds = array<i64: 784, 512>}, {pipeline_mode = #tpu.pipeline_mode<synchronous>, transform_indices = @transform_2, window_bounds = array<i64: 1, 512>}, {pipeline_mode = #tpu.pipeline_mode<synchronous>, transform_indices = @transform_3, window_bounds = array<i64: 512, 128>}, {pipeline_mode = #tpu.pipeline_mode<synchronous>, transform_indices = @transform_4, window_bounds = array<i64: 1, 128>}, {transform_indices = @transform_5, window_bounds = array<i64: 8, 128>}]} {
    %c0 = arith.constant 0 : index
    %c0_0 = arith.constant 0 : index
    %0 = vector.load %arg1[%c0, %c0_0] : memref<8x784xf32, #tpu.memory_space<vmem>>, vector<8x784xf32>
    %1 = arith.truncf %0 : vector<8x784xf32> to vector<8x784xbf16>
    %c0_1 = arith.constant 0 : index
    %c0_2 = arith.constant 0 : index
    %2 = vector.load %arg2[%c0_1, %c0_2] : memref<784x512xbf16, #tpu.memory_space<vmem>>, vector<784x512xbf16>
    %cst = arith.constant dense<0.000000e+00> : vector<8x512xf32>
    %3 = tpu.matmul %1, %2, %cst {dimension_numbers = #tpu.dot_dimension_numbers<[1], [0], [0], [1], [0, 0, 1, 1], [], []>} : vector<8x784xbf16>, vector<784x512xbf16>, vector<8x512xf32> -> vector<8x512xf32>
    %c0_3 = arith.constant 0 : index
    %c0_4 = arith.constant 0 : index
    %4 = vector.load %arg3[%c0_3, %c0_4] : memref<1x512xf32, #tpu.memory_space<vmem>>, vector<1x512xf32>
    %5 = vector.broadcast %4 : vector<1x512xf32> to vector<8x512xf32>
    %6 = arith.addf %3, %5 : vector<8x512xf32>
    %cst_5 = arith.constant 0.000000e+00 : f32
    %7 = vector.broadcast %cst_5 : f32 to vector<8x512xf32>
    %8 = arith.maximumf %6, %7 : vector<8x512xf32>
    %9 = arith.truncf %8 : vector<8x512xf32> to vector<8x512xbf16>
    %c0_6 = arith.constant 0 : index
    %c0_7 = arith.constant 0 : index
    %10 = vector.load %arg4[%c0_6, %c0_7] : memref<512x128xbf16, #tpu.memory_space<vmem>>, vector<512x128xbf16>
    %cst_8 = arith.constant dense<0.000000e+00> : vector<8x128xf32>
    %11 = tpu.matmul %9, %10, %cst_8 {dimension_numbers = #tpu.dot_dimension_numbers<[1], [0], [0], [1], [0, 0, 1, 1], [], []>} : vector<8x512xbf16>, vector<512x128xbf16>, vector<8x128xf32> -> vector<8x128xf32>
    %c0_9 = arith.constant 0 : index
    %c0_10 = arith.constant 0 : index
    %12 = vector.load %arg5[%c0_9, %c0_10] : memref<1x128xf32, #tpu.memory_space<vmem>>, vector<1x128xf32>
    %13 = vector.broadcast %12 : vector<1x128xf32> to vector<8x128xf32>
    %14 = arith.addf %11, %13 : vector<8x128xf32>
    %c0_11 = arith.constant 0 : index
    %c0_12 = arith.constant 0 : index
    %15 = vector.load %arg6[%c0_11, %c0_12] : memref<8x128xf32, #tpu.memory_space<vmem>>, vector<8x128xf32>
    tpu.vector_store %arg6[%c0_11, %c0_12], %14 {strides = array<i32>} : memref<8x128xf32, #tpu.memory_space<vmem>>, vector<8x128xf32>,
    return
  }
  func.func @transform_0(%arg0: i32) -> (i32, i32) {
    %c0_i32 = arith.constant 0 : i32
    %c0_i32_0 = arith.constant 0 : i32
    return %arg0, %c0_i32 : i32, i32
  }
  func.func @transform_1(%arg0: i32) -> (i32, i32) {
    %c0_i32 = arith.constant 0 : i32
    %c0_i32_0 = arith.constant 0 : i32
    %c0_i32_1 = arith.constant 0 : i32
    return %c0_i32, %c0_i32_0 : i32, i32
  }
  func.func @transform_2(%arg0: i32) -> (i32, i32) {
    %c0_i32 = arith.constant 0 : i32
    %c0_i32_0 = arith.constant 0 : i32
    %c0_i32_1 = arith.constant 0 : i32
    return %c0_i32, %c0_i32_0 : i32, i32
  }
  func.func @transform_3(%arg0: i32) -> (i32, i32) {
    %c0_i32 = arith.constant 0 : i32
    %c0_i32_0 = arith.constant 0 : i32
    %c0_i32_1 = arith.constant 0 : i32
    return %c0_i32, %c0_i32_0 : i32, i32
  }
  func.func @transform_4(%arg0: i32) -> (i32, i32) {
    %c0_i32 = arith.constant 0 : i32
    %c0_i32_0 = arith.constant 0 : i32
    %c0_i32_1 = arith.constant 0 : i32
    return %c0_i32, %c0_i32_0 : i32, i32
  }
  func.func @transform_5(%arg0: i32) -> (i32, i32) {
    %c0_i32 = arith.constant 0 : i32
    %c0_i32_0 = arith.constant 0 : i32
    return %arg0, %c0_i32 : i32, i32
  }
}

</mosaic_0001>

<bundles_post_ra>
// kernel: _encoder_call.1
= control target key start
LH: loop header
LB: loop body
LE: loop exit
PB: predicated region body
PF: predicated region fallthrough
CT: control target
= control target key end

     0   :  { %10 = vsyncpa [#allocation3], 0  ;;  %s2760_s0 = inlined_call_operand.hbm [shape: f32[8,784], index: 0, kind: input, shape index: {}]   ;;  %s2761_s1 = inlined_call_operand.hbm [shape: bf16[784,512], index: 1, kind: input, shape index: {}]   ;;  %s2762_s2 = inlined_call_operand.hbm [shape: f32[1,512], index: 2, kind: input, shape index: {}]   ;;  %s2763_s3 = inlined_call_operand.hbm [shape: bf16[512,128], index: 3, kind: input, shape index: {}]   ;;  %s2764_s4 = inlined_call_operand.vmem [shape: f32[1,128], index: 4, kind: input, shape index: {}]   ;;  %s2765_s5 = inlined_call_operand.vmem [shape: f32[8,128], index: 5, kind: output, shape index: {}]  }
   0x1   :  { %11 = vsyncpa [#allocation5], 0 }
   0x2   :  { %12 = vsyncpa [#allocation8], 0  ;;  %s2671_s18 = smov [#allocation4]  }
   0x3   :  { %s28_s19 = sshll.u32 %s2671_s18, 4  ;;  %s29_s19 = int_to_ptr.vmem [resolvable:$true] %s28_s19 }
   0x4   :  { %s2593_s20 = scalar_lea.vmem %s29_s19, 25088  ;;  %p2598_p1 = scmp.lt.s32.totalorder %s29_s19, %s29_s19 }
   0x5   :  { %p2594_p0 = scmp.ne.s32.totalorder %s29_s19, %s2593_s20  ;;  %p2599_p2 = scmp.lt.s32.totalorder %s2593_s20, %s2593_s20 }
   0x7   :  { %p2600_p3 = por %p2599_p2, %p2598_p1 }
   0x9   :  { %p2601_p4 = pnand %p2600_p3, %p2594_p0 }
   0xb   :  { %2604 = shalt.err (!%p2601_p4)
}
   0xc   :  { %s2672_s21 = smov 256   ;;  %s2673_s22 = smov 16  }
   0xd   :  { %34 = dma.hbm_to_vmem [thread:$0]  %s2761_s1, 25088, %s29_s19, [#allocation5], %s2672_s21, %s2672_s21, %s2673_s22  }
   0xe   :  { %s2674_s25 = smov [#allocation2]   ;;  %s2675_s27 = smov [#allocation6]  }
   0xf   :  { %s19_s26 = sshll.u32 %s2674_s25, 4  ;;  %s41_s28 = sshll.u32 %s2675_s27, 4  ;;  %s20_s26 = int_to_ptr.vmem [resolvable:$true] %s19_s26  ;;  %s42_s28 = int_to_ptr.vmem [resolvable:$true] %s41_s28 }
  0x10   :  { %s2613_s29 = scalar_lea.vmem %s20_s26, 896  ;;  %p2618_p6 = scmp.lt.s32.totalorder %s20_s26, %s20_s26 }
  0x11   :  { %p2614_p5 = scmp.ne.s32.totalorder %s20_s26, %s2613_s29  ;;  %p2619_p7 = scmp.lt.s32.totalorder %s2613_s29, %s2613_s29 }
  0x13   :  { %p2620_p8 = por %p2619_p7, %p2618_p6 }
  0x15   :  { %p2621_p9 = pnand %p2620_p8, %p2614_p5 }
  0x17   :  { %2624 = shalt.err (!%p2621_p9)
}
  0x18   :  { %22 = dma.hbm_to_vmem [thread:$0]  %s2760_s0, 896, %s20_s26, [#allocation3]  }
  0x19   :  { %s2633_s7 = scalar_lea.vmem %s42_s28, 64  ;;  %p2638_p11 = scmp.lt.s32.totalorder %s42_s28, %s42_s28 }
  0x1a   :  { %p2634_p10 = scmp.ne.s32.totalorder %s42_s28, %s2633_s7  ;;  %p2639_p12 = scmp.lt.s32.totalorder %s2633_s7, %s2633_s7 }
  0x1c   :  { %p2640_p13 = por %p2639_p12, %p2638_p11 }
  0x1e   :  { %p2641_p0 = pnand %p2640_p13, %p2634_p10 }
  0x20   :  { %2644 = shalt.err (!%p2641_p0)
}
  0x21   :  { %44 = dma.hbm_to_vmem [thread:$0]  %s2762_s2, 64, %s42_s28, [#allocation5]  }
  0x22   :  { %s2676_s9 = smov [#allocation7]  }
  0x23   :  { %s50_s10 = sshll.u32 %s2676_s9, 4  ;;  %s51_s10 = int_to_ptr.vmem [resolvable:$true] %s50_s10 }
  0x24   :  { %s2653_s11 = scalar_lea.vmem %s51_s10, 4096  ;;  %p2658_p2 = scmp.lt.s32.totalorder %s51_s10, %s51_s10 }
  0x25   :  { %p2654_p1 = scmp.ne.s32.totalorder %s51_s10, %s2653_s11  ;;  %p2659_p3 = scmp.lt.s32.totalorder %s2653_s11, %s2653_s11 }
  0x27   :  { %p2660_p4 = por %p2659_p3, %p2658_p2 }
  0x29   :  { %p2661_p5 = pnand %p2660_p4, %p2654_p1 }
  0x2b   :  { %2664 = shalt.err (!%p2661_p5)
}
  0x2c   :  { %s2677_s0 = smov 64   ;;  %s2678_s12 = smov 4  }
  0x2d   :  { %56 = dma.hbm_to_vmem [thread:$0]  %s2763_s3, 4096, %s51_s10, [#allocation8], %s2677_s0, %s2677_s0, %s2678_s12  }
  0x2e   :  { %2665 = dma.done.wait [#allocation3], 896  }
  0x2f   :  { %2666 = vsyncadd [#allocation3], 4294966400 }
  0x30   :  { %2667 = dma.done.wait [#allocation5], 25152  }
  0x31   :  { %2668 = vsyncadd [#allocation5], 4294942144 }
  0x32   :  { %2669 = dma.done.wait [#allocation8], 4096  }
  0x33   :  { %2670 = vsyncadd [#allocation8], 4294963200  ;;  %v2259_v0 = vld [vmem:[#allocation4 + $0xe4] ss:$16 sps:$4 sm:$0xff]   ;;  %v2263_v2 = vld [vmem:[#allocation4 + $0xe0] ss:$16 sps:$4 sm:$0xff]  }
  0x34   :  { %v2261_v1 = vld [vmem:[#allocation4 + $0x2e4] ss:$16 sps:$4 sm:$0xff]   ;;  %1288 = vmatprep.subr.bf16.mxu0 %v2259_v0  ;;  %v2264_v3 = vld [vmem:[#allocation4 + $0x2e0] ss:$16 sps:$4 sm:$0xff]   ;;  %vm1284_vm0 = vcmask 130048  }
  0x35   :  { %1329 = vmatprep.subr.bf16.mxu1 %v2261_v1  ;;  %v2265_v4 = vld [vmem:[#allocation4 + $0xc4] ss:$16 sps:$4 sm:$0xff]   ;;  %1289 = vmatpush1.bf16.msra.mxu0 %v2263_v2  ;;  %v2269_v6 = vld [vmem:[#allocation4 + $0xc0] ss:$16 sps:$4 sm:$0xff]  }
  0x36   :  { %1330 = vmatpush1.bf16.msra.mxu1 %v2264_v3  ;;  %v2267_v5 = vld [vmem:[#allocation4 + $0x2c4] ss:$16 sps:$4 sm:$0xff]   ;;  %1290 = vmatprep.subr.bf16.mxu0 %v2265_v4  ;;  %v2270_v7 = vld [vmem:[#allocation4 + $0x2c0] ss:$16 sps:$4 sm:$0xff]   ;;  %v72_v4 = vld [vmem:[#allocation2] sm:$0xff] }
  0x37   :  { %1331 = vmatprep.subr.bf16.mxu1 %v2267_v5  ;;  %v2271_v8 = vld [vmem:[#allocation4 + $0xa4] ss:$16 sps:$4 sm:$0xff]   ;;  %v2275_v10 = vld [vmem:[#allocation4 + $0xa0] ss:$16 sps:$4 sm:$0xff]   ;;  %v74_v5 = vld [vmem:[#allocation2 + $0x10] sm:$0xff] }
  0x38   :  { %v2273_v9 = vld [vmem:[#allocation4 + $0x2a4] ss:$16 sps:$4 sm:$0xff]   ;;  %v2276_v11 = vld [vmem:[#allocation4 + $0x2a0] ss:$16 sps:$4 sm:$0xff]  }
  0x39   :  { %1291 = vmatpush1.bf16.msra.mxu0 %v2269_v6  ;;  %v2277_v12 = vld [vmem:[#allocation4 + $0x84] ss:$16 sps:$4 sm:$0xff]   ;;  %v2281_v14 = vld [vmem:[#allocation4 + $0x80] ss:$16 sps:$4 sm:$0xff]  }
  0x3a   :  { %1332 = vmatpush1.bf16.msra.mxu1 %v2270_v7  ;;  %1292 = vmatprep.subr.bf16.mxu0 %v2271_v8  ;;  %v2279_v13 = vld [vmem:[#allocation4 + $0x284] ss:$16 sps:$4 sm:$0xff]   ;;  %v2282_v15 = vld [vmem:[#allocation4 + $0x280] ss:$16 sps:$4 sm:$0xff]   ;;  %v2728_v8 = vpack.c.bf16 %v72_v4, %v72_v4  ;;  %v2438_v4 = vld [vmem:[#allocation4 + $0x16c] ss:$16 sps:$4 sm:$0xff]  }
  0x3b   :  { %1333 = vmatprep.subr.bf16.mxu1 %v2273_v9  ;;  %v2283_v16 = vld [vmem:[#allocation4 + $0x64] ss:$16 sps:$4 sm:$0xff]   ;;  %v2287_v18 = vld [vmem:[#allocation4 + $0x60] ss:$16 sps:$4 sm:$0xff]   ;;  %v2730_v9 = vpack.c.bf16 %v74_v5, %v74_v5 }
  0x3c   :  { %v2285_v17 = vld [vmem:[#allocation4 + $0x264] ss:$16 sps:$4 sm:$0xff]   ;;  %v2288_v19 = vld [vmem:[#allocation4 + $0x260] ss:$16 sps:$4 sm:$0xff]  }
  0x3d   :  { %1293 = vmatpush1.bf16.msra.mxu0 %v2275_v10  ;;  %v2289_v20 = vld [vmem:[#allocation4 + $0x44] ss:$16 sps:$4 sm:$0xff]   ;;  %v2293_v22 = vld [vmem:[#allocation4 + $0x40] ss:$16 sps:$4 sm:$0xff]  }
  0x3e   :  { %1334 = vmatpush1.bf16.msra.mxu1 %v2276_v11  ;;  %1294 = vmatprep.subr.bf16.mxu0 %v2277_v12  ;;  %v2291_v21 = vld [vmem:[#allocation4 + $0x244] ss:$16 sps:$4 sm:$0xff]   ;;  %v2294_v23 = vld [vmem:[#allocation4 + $0x240] ss:$16 sps:$4 sm:$0xff]  }
  0x3f   :  { %1335 = vmatprep.subr.bf16.mxu1 %v2279_v13  ;;  %v2295_v24 = vld [vmem:[#allocation4 + $0x24] ss:$16 sps:$4 sm:$0xff]   ;;  %v2299_v26 = vld [vmem:[#allocation4 + $0x20] ss:$16 sps:$4 sm:$0xff]   ;;  %v2366_v13 = vld [vmem:[#allocation4 + $0xec] ss:$16 sps:$4 sm:$0xff]  }
  0x40   :  { %v2297_v25 = vld [vmem:[#allocation4 + $0x224] ss:$16 sps:$4 sm:$0xff]   ;;  %v2300_v27 = vld [vmem:[#allocation4 + $0x220] ss:$16 sps:$4 sm:$0xff]  }
  0x41   :  { %1295 = vmatpush1.bf16.msra.mxu0 %v2281_v14  ;;  %v2301_v28 = vld [vmem:[#allocation4 + $0x4] ss:$16 sps:$4 sm:$0xff]   ;;  %v2305_v30 = vld [vmem:[#allocation4] ss:$16 sps:$4 sm:$0xff]  }
  0x42   :  { %1336 = vmatpush1.bf16.msra.mxu1 %v2282_v15  ;;  %1296 = vmatprep.subr.bf16.mxu0 %v2283_v16  ;;  %v2303_v29 = vld [vmem:[#allocation4 + $0x204] ss:$16 sps:$4 sm:$0xff]   ;;  %v2306_v31 = vld [vmem:[#allocation4 + $0x200] ss:$16 sps:$4 sm:$0xff]   ;;  %v78_v15 = vld [vmem:[#allocation2 + $0x30] sm:$0xff]  ;;  %v2679_v16 = vmov 0  }
  0x43   :  { %1337 = vmatprep.subr.bf16.mxu1 %v2285_v17  ;;  %v2307_v32 = vld [vmem:[#allocation4 + $0x1e4] ss:$16 sps:$4 sm:$0xff]   ;;  %v2311_v34 = vld [vmem:[#allocation4 + $0x1e0] ss:$16 sps:$4 sm:$0xff]  }
  0x44   :  { %v2309_v33 = vld [vmem:[#allocation4 + $0x3e4] ss:$16 sps:$4 sm:$0xff]   ;;  %v2312_v35 = vld [vmem:[#allocation4 + $0x3e0] ss:$16 sps:$4 sm:$0xff]  }
  0x45   :  { %1297 = vmatpush1.bf16.msra.mxu0 %v2287_v18  ;;  %v2313_v36 = vld [vmem:[#allocation4 + $0x1c4] ss:$16 sps:$4 sm:$0xff]   ;;  %v2317_v38 = vld [vmem:[#allocation4 + $0x1c0] ss:$16 sps:$4 sm:$0xff]   ;;  %v2364_v18 = vld [vmem:[#allocation4 + $0xe8] ss:$16 sps:$4 sm:$0xff]  }
  0x46   :  { %1338 = vmatpush1.bf16.msra.mxu1 %v2288_v19  ;;  %1298 = vmatprep.subr.bf16.mxu0 %v2289_v20  ;;  %v2315_v37 = vld [vmem:[#allocation4 + $0x3c4] ss:$16 sps:$4 sm:$0xff]   ;;  %v2318_v39 = vld [vmem:[#allocation4 + $0x3c0] ss:$16 sps:$4 sm:$0xff]   ;;  %v2735_v19 = vpack.c.bf16 %v78_v15, %v78_v15  ;;  %v76_v15 = vld [vmem:[#allocation2 + $0x20] sm:$0xff] }
  0x47   :  { %1339 = vmatprep.subr.bf16.mxu1 %v2291_v21  ;;  %v2319_v40 = vld [vmem:[#allocation4 + $0x1a4] ss:$16 sps:$4 sm:$0xff]   ;;  %v2323_v42 = vld [vmem:[#allocation4 + $0x1a0] ss:$16 sps:$4 sm:$0xff]   ;;  %v2372_v21 = vld [vmem:[#allocation4 + $0xcc] ss:$16 sps:$4 sm:$0xff]  }
  0x48   :  { %v2321_v41 = vld [vmem:[#allocation4 + $0x3a4] ss:$16 sps:$4 sm:$0xff]   ;;  %v2324_v43 = vld [vmem:[#allocation4 + $0x3a0] ss:$16 sps:$4 sm:$0xff]  }
  0x49   :  { %1299 = vmatpush1.bf16.msra.mxu0 %v2293_v22  ;;  %v2325_v44 = vld [vmem:[#allocation4 + $0x184] ss:$16 sps:$4 sm:$0xff]   ;;  %v2329_v47 = vld [vmem:[#allocation4 + $0x180] ss:$16 sps:$4 sm:$0xff]  }
  0x4a   :  { %1340 = vmatpush1.bf16.msra.mxu1 %v2294_v23  ;;  %1300 = vmatprep.subr.bf16.mxu0 %v2295_v24  ;;  %v2327_v45 = vld [vmem:[#allocation4 + $0x384] ss:$16 sps:$4 sm:$0xff]   ;;  %v2330_v48 = vld [vmem:[#allocation4 + $0x380] ss:$16 sps:$4 sm:$0xff]   ;;  %v2370_v23 = vld [vmem:[#allocation4 + $0xc8] ss:$16 sps:$4 sm:$0xff]  }
  0x4b   :  { %1341 = vmatprep.subr.bf16.mxu1 %v2297_v25  ;;  %v73_v46 = vld [vmem:[#allocation2 + $0x8] sm:$0xff]  ;;  %v75_v50 = vld [vmem:[#allocation2 + $0x18] sm:$0xff]  ;;  %v2378_v25 = vld [vmem:[#allocation4 + $0xac] ss:$16 sps:$4 sm:$0xff]  }
  0x4c   :  { %v2722_v49 = vpack.c.bf16 %v73_v46, %v73_v46  ;;  %v2331_v51 = vld [vmem:[#allocation4 + $0x164] ss:$16 sps:$4 sm:$0xff]   ;;  %v2724_v52 = vpack.c.bf16 %v75_v50, %v75_v50  ;;  %v2335_v54 = vld [vmem:[#allocation4 + $0x160] ss:$16 sps:$4 sm:$0xff]  }
  0x4d   :  { %1301 = vmatpush1.bf16.msra.mxu0 %v2299_v26  ;;  %v2333_v53 = vld [vmem:[#allocation4 + $0x364] ss:$16 sps:$4 sm:$0xff]   ;;  %v2336_v55 = vld [vmem:[#allocation4 + $0x360] ss:$16 sps:$4 sm:$0xff]  }
  0x4e   :  { %1342 = vmatpush1.bf16.msra.mxu1 %v2300_v27  ;;  %1302 = vmatprep.subr.bf16.mxu0 %v2301_v28  ;;  %v2337_v56 = vld [vmem:[#allocation4 + $0x144] ss:$16 sps:$4 sm:$0xff]   ;;  %v2341_v58 = vld [vmem:[#allocation4 + $0x140] ss:$16 sps:$4 sm:$0xff]   ;;  %v2376_v27 = vld [vmem:[#allocation4 + $0xa8] ss:$16 sps:$4 sm:$0xff]  }
  0x4f   :  { %1343 = vmatprep.subr.bf16.mxu1 %v2303_v29  ;;  %1320 = vmatprep.mubr.bf16.mxu0 %v2722_v49  ;;  %v2339_v57 = vld [vmem:[#allocation4 + $0x344] ss:$16 sps:$4 sm:$0xff]   ;;  %v2342_v59 = vld [vmem:[#allocation4 + $0x340] ss:$16 sps:$4 sm:$0xff]   ;;  %v2384_v29 = vld [vmem:[#allocation4 + $0x8c] ss:$16 sps:$4 sm:$0xff]  }
  0x50   :  { %1361 = vmatprep.mubr.bf16.mxu1 %v2724_v52  ;;  %v2343_v60 = vld [vmem:[#allocation4 + $0x124] ss:$16 sps:$4 sm:$0xff]   ;;  %v2347_v62 = vld [vmem:[#allocation4 + $0x120] ss:$16 sps:$4 sm:$0xff]  }
  0x51   :  { %1303 = vmatpush1.bf16.msra.mxu0 %v2305_v30  ;;  %v2345_v61 = vld [vmem:[#allocation4 + $0x324] ss:$16 sps:$4 sm:$0xff]   ;;  %v2348_v63 = vld [vmem:[#allocation4 + $0x320] ss:$16 sps:$4 sm:$0xff]  }
  0x52   :  { %1344 = vmatpush1.bf16.msra.mxu1 %v2306_v31  ;;  %1304 = vmatprep.subr.bf16.mxu0 %v2307_v32  ;;  %v2349_v0 = vld [vmem:[#allocation4 + $0x104] ss:$16 sps:$4 sm:$0xff]   ;;  %v2353_v2 = vld [vmem:[#allocation4 + $0x100] ss:$16 sps:$4 sm:$0xff]   ;;  %v2382_v31 = vld [vmem:[#allocation4 + $0x88] ss:$16 sps:$4 sm:$0xff]  }
  0x53   :  { %1345 = vmatprep.subr.bf16.mxu1 %v2309_v33  ;;  %v2351_v1 = vld [vmem:[#allocation4 + $0x304] ss:$16 sps:$4 sm:$0xff]   ;;  %v2354_v3 = vld [vmem:[#allocation4 + $0x300] ss:$16 sps:$4 sm:$0xff]   ;;  %v2390_v33 = vld [vmem:[#allocation4 + $0x6c] ss:$16 sps:$4 sm:$0xff]  }
  0x54   :  { %v2357_v6 = vld [vmem:[#allocation4 + $0x4e4] ss:$16 sps:$4 sm:$0xff]   ;;  %v2355_v10 = vld [vmem:[#allocation4 + $0x4e0] ss:$16 sps:$4 sm:$0xff]  }
  0x55   :  { %1305 = vmatpush2.bf16.msra.mxu0 %v2311_v34  ;;  %v2360_v7 = vld [vmem:[#allocation4 + $0x604] ss:$16 sps:$4 sm:$0xff]   ;;  %v2358_v11 = vld [vmem:[#allocation4 + $0x600] ss:$16 sps:$4 sm:$0xff]  }
  0x56   :  { %1346 = vmatpush2.bf16.msra.mxu1 %v2312_v35  ;;  %1306 = vmatprep.subr.bf16.mxu0 %v2313_v36  ;;  %v2363_v12 = vld [vmem:[#allocation4 + $0x4c4] ss:$16 sps:$4 sm:$0xff]   ;;  %v2361_v14 = vld [vmem:[#allocation4 + $0x4c0] ss:$16 sps:$4 sm:$0xff]  }
  0x57   :  { %1347 = vmatprep.subr.bf16.mxu1 %v2315_v37  ;;  %v2369_v17 = vld [vmem:[#allocation4 + $0x4a4] ss:$16 sps:$4 sm:$0xff]   ;;  %v2367_v20 = vld [vmem:[#allocation4 + $0x4a0] ss:$16 sps:$4 sm:$0xff]   ;;  %v2388_v37 = vld [vmem:[#allocation4 + $0x68] ss:$16 sps:$4 sm:$0xff]  }
  0x58   :  { %v2375_v22 = vld [vmem:[#allocation4 + $0x484] ss:$16 sps:$4 sm:$0xff]   ;;  %v2373_v24 = vld [vmem:[#allocation4 + $0x480] ss:$16 sps:$4 sm:$0xff]  }
  0x59   :  { %1307 = vmatpush2.bf16.msra.mxu0 %v2317_v38  ;;  %v2381_v26 = vld [vmem:[#allocation4 + $0x464] ss:$16 sps:$4 sm:$0xff]   ;;  %v2379_v28 = vld [vmem:[#allocation4 + $0x460] ss:$16 sps:$4 sm:$0xff]  }
  0x5a   :  { %1348 = vmatpush2.bf16.msra.mxu1 %v2318_v39  ;;  %1308 = vmatprep.subr.bf16.mxu0 %v2319_v40  ;;  %v2387_v30 = vld [vmem:[#allocation4 + $0x444] ss:$16 sps:$4 sm:$0xff]   ;;  %v2385_v32 = vld [vmem:[#allocation4 + $0x440] ss:$16 sps:$4 sm:$0xff]   ;;  %v2396_v39 = vld [vmem:[#allocation4 + $0x4c] ss:$16 sps:$4 sm:$0xff]  }
  0x5b   :  { %1349 = vmatprep.subr.bf16.mxu1 %v2321_v41  ;;  %v2393_v34 = vld [vmem:[#allocation4 + $0x424] ss:$16 sps:$4 sm:$0xff]   ;;  %v2391_v38 = vld [vmem:[#allocation4 + $0x420] ss:$16 sps:$4 sm:$0xff]   ;;  %v2394_v41 = vld [vmem:[#allocation4 + $0x48] ss:$16 sps:$4 sm:$0xff]  }
  0x5c   :  { %v77_v35 = vld [vmem:[#allocation2 + $0x28] sm:$0xff] }
  0x5d   :  { %1309 = vmatpush2.bf16.msra.mxu0 %v2323_v42  ;;  %v2740_v36 = vpack.c.bf16 %v77_v35, %v77_v35  ;;  %v2399_v40 = vld [vmem:[#allocation4 + $0x404] ss:$16 sps:$4 sm:$0xff]   ;;  %v2397_v42 = vld [vmem:[#allocation4 + $0x400] ss:$16 sps:$4 sm:$0xff]   ;;  %v2477_v35 = vld [vmem:[#allocation4 + $0x26c] ss:$16 sps:$4 sm:$0xff]  }
  0x5e   :  { %1350 = vmatpush2.bf16.msra.mxu1 %v2324_v43  ;;  %1310 = vmatprep.subr.bf16.mxu0 %v2325_v44  ;;  %v2402_v43 = vld [vmem:[#allocation4 + $0x2c] ss:$16 sps:$4 sm:$0xff]   ;;  %v2405_v44 = vld [vmem:[#allocation4 + $0x5e4] ss:$16 sps:$4 sm:$0xff]   ;;  %v2403_v46 = vld [vmem:[#allocation4 + $0x5e0] ss:$16 sps:$4 sm:$0xff]  }
  0x5f   :  { %1351 = vmatprep.subr.bf16.mxu1 %v2327_v45  ;;  %v2400_v45 = vld [vmem:[#allocation4 + $0x28] ss:$16 sps:$4 sm:$0xff]   ;;  %v2409_v50 = vld [vmem:[#allocation4 + $0x5c0] ss:$16 sps:$4 sm:$0xff]   ;;  %v2441_v5 = vld [vmem:[#allocation4 + $0x524] ss:$16 sps:$4 sm:$0xff]  }
  0x61   :  { %1311 = vmatpush2.bf16.msra.mxu0 %v2329_v47  ;;  %v2408_v47 = vld [vmem:[#allocation4 + $0xc] ss:$16 sps:$4 sm:$0xff]  }
  0x62   :  { %1352 = vmatpush2.bf16.msra.mxu1 %v2330_v48  ;;  %1312 = vmatprep.subr.bf16.mxu0 %v2331_v51  ;;  %v2411_v48 = vld [vmem:[#allocation4 + $0x5c4] ss:$16 sps:$4 sm:$0xff]   ;;  %v2414_v51 = vld [vmem:[#allocation4 + $0x1ec] ss:$16 sps:$4 sm:$0xff]  }
  0x63   :  { %1353 = vmatprep.subr.bf16.mxu1 %v2333_v53  ;;  %v2417_v53 = vld [vmem:[#allocation4 + $0x5a4] ss:$16 sps:$4 sm:$0xff]  }
  0x65   :  { %1313 = vmatpush2.bf16.msra.mxu0 %v2335_v54  ;;  %v2412_v54 = vld [vmem:[#allocation4 + $0x1e8] ss:$16 sps:$4 sm:$0xff]  }
  0x66   :  { %1354 = vmatpush2.bf16.msra.mxu1 %v2336_v55  ;;  %1314 = vmatprep.subr.bf16.mxu0 %v2337_v56  ;;  %v2415_v55 = vld [vmem:[#allocation4 + $0x5a0] ss:$16 sps:$4 sm:$0xff]   ;;  %v2420_v56 = vld [vmem:[#allocation4 + $0x1cc] ss:$16 sps:$4 sm:$0xff]  }
  0x67   :  { %1355 = vmatprep.subr.bf16.mxu1 %v2339_v57  ;;  %v2423_v57 = vld [vmem:[#allocation4 + $0x584] ss:$16 sps:$4 sm:$0xff]  }
  0x69   :  { %1315 = vmatpush2.bf16.msra.mxu0 %v2341_v58  ;;  %v2418_v58 = vld [vmem:[#allocation4 + $0x1c8] ss:$16 sps:$4 sm:$0xff]  }
  0x6a   :  { %1356 = vmatpush2.bf16.msra.mxu1 %v2342_v59  ;;  %1316 = vmatprep.subr.bf16.mxu0 %v2343_v60  ;;  %v2421_v59 = vld [vmem:[#allocation4 + $0x580] ss:$16 sps:$4 sm:$0xff]   ;;  %v2426_v60 = vld [vmem:[#allocation4 + $0x1ac] ss:$16 sps:$4 sm:$0xff]  }
  0x6b   :  { %1357 = vmatprep.subr.bf16.mxu1 %v2345_v61  ;;  %v2429_v61 = vld [vmem:[#allocation4 + $0x564] ss:$16 sps:$4 sm:$0xff]  }
  0x6d   :  { %1317 = vmatpush2.bf16.msra.mxu0 %v2347_v62  ;;  %v2424_v62 = vld [vmem:[#allocation4 + $0x1a8] ss:$16 sps:$4 sm:$0xff]  }
  0x6e   :  { %1358 = vmatpush2.bf16.msra.mxu1 %v2348_v63  ;;  %1318 = vmatprep.subr.bf16.mxu0 %v2349_v0  ;;  %v2427_v63 = vld [vmem:[#allocation4 + $0x560] ss:$16 sps:$4 sm:$0xff]   ;;  %v2432_v0 = vld [vmem:[#allocation4 + $0x18c] ss:$16 sps:$4 sm:$0xff]  }
  0x6f   :  { %1359 = vmatprep.subr.bf16.mxu1 %v2351_v1  ;;  %v2435_v1 = vld [vmem:[#allocation4 + $0x544] ss:$16 sps:$4 sm:$0xff]  }
  0x71   :  { %1319 = vmatpush2.bf16.msra.mxu0 %v2353_v2  ;;  %v2430_v2 = vld [vmem:[#allocation4 + $0x188] ss:$16 sps:$4 sm:$0xff]  }
  0x72   :  { %1360 = vmatpush2.bf16.msra.mxu1 %v2354_v3  ;;  %1370 = vmatprep.subr.bf16.mxu0 %v2357_v6  ;;  %v2433_v3 = vld [vmem:[#allocation4 + $0x540] ss:$16 sps:$4 sm:$0xff]   ;;  %v2436_v6 = vld [vmem:[#allocation4 + $0x168] ss:$16 sps:$4 sm:$0xff]  }
  0x73   :  { %1425 = vmatprep.subr.bf16.mxu1 %v2360_v7  ;;  %v2439_v7 = vld [vmem:[#allocation4 + $0x520] ss:$16 sps:$4 sm:$0xff]  }
  0x74   :  { %1321 = vmatmul.mubr.bf16.vlgmr.msra.gmra.mxu0 %v2728_v8 }
  0x75   :  { %1362 = vmatmul.mubr.bf16.vlgmr.msra.gmra.mxu1 %v2730_v9  ;;  %1371 = vmatpush1.bf16.msra.mxu0 %v2355_v10  ;;  %v2444_v10 = vld [vmem:[#allocation4 + $0x14c] ss:$16 sps:$4 sm:$0xff]  }
  0x76   :  { %1426 = vmatpush1.bf16.msra.mxu1 %v2358_v11  ;;  %1372 = vmatprep.subr.bf16.mxu0 %v2363_v12  ;;  %v2447_v11 = vld [vmem:[#allocation4 + $0x504] ss:$16 sps:$4 sm:$0xff]   ;;  %v2442_v12 = vld [vmem:[#allocation4 + $0x148] ss:$16 sps:$4 sm:$0xff]  }
  0x77   :  { %1443 = vmatprep.mubr.bf16.mxu1 %v2679_v16  ;;  %1452 = vmatprep.subr.bf16.mxu1 %v2366_v13  ;;  %v2445_v13 = vld [vmem:[#allocation4 + $0x500] ss:$16 sps:$4 sm:$0xff]  }
  0x78   :  { %1402 = vmatprep.mubr.bf16.mxu0 %v2740_v36 }
  0x79   :  { %1373 = vmatpush1.bf16.msra.mxu0 %v2361_v14  ;;  %v2450_v14 = vld [vmem:[#allocation4 + $0x12c] ss:$16 sps:$4 sm:$0xff]  }
  0x7a   :  { %1374 = vmatprep.subr.bf16.mxu0 %v2369_v17  ;;  %v2453_v17 = vld [vmem:[#allocation4 + $0x2ec] ss:$16 sps:$4 sm:$0xff]  }
  0x7d   :  { %2171 = vmatmul.mubr.msk.bf16.vlgmr.msra.gmra.mxu1 %vm1284_vm0, %v2735_v19  ;;  %1375 = vmatpush1.bf16.msra.mxu0 %v2367_v20  ;;  %v2743_v20 = vpack.c.bf16 %v76_v15, %v76_v15  ;;  %v2540_v15 = vld [vmem:[#allocation4 + $0x54c] ss:$16 sps:$4 sm:$0xff]  }
  0x7e   :  { %1453 = vmatpush1.bf16.msra.mxu1 %v2364_v18  ;;  %1376 = vmatprep.subr.bf16.mxu0 %v2375_v22  ;;  %v2448_v18 = vld [vmem:[#allocation4 + $0x128] ss:$16 sps:$4 sm:$0xff]   ;;  %v2456_v22 = vld [vmem:[#allocation4 + $0x10c] ss:$16 sps:$4 sm:$0xff]  }
  0x7f   :  { %1454 = vmatprep.subr.bf16.mxu1 %v2372_v21  ;;  %1484 = vmatprep.mubr.bf16.mxu1 %v2722_v49  ;;  %v2406_v49 = vld [vmem:[#allocation4 + $0x8] ss:$16 sps:$4 sm:$0xff]  }
  0x80   :  { %v2451_v21 = vld [vmem:[#allocation4 + $0x2e8] ss:$16 sps:$4 sm:$0xff]  }
  0x81   :  { %1377 = vmatpush1.bf16.msra.mxu0 %v2373_v24  ;;  %v2454_v24 = vld [vmem:[#allocation4 + $0x108] ss:$16 sps:$4 sm:$0xff]  }
  0x82   :  { %1455 = vmatpush1.bf16.msra.mxu1 %v2370_v23  ;;  %1378 = vmatprep.subr.bf16.mxu0 %v2381_v26  ;;  %v2459_v23 = vld [vmem:[#allocation4 + $0x2cc] ss:$16 sps:$4 sm:$0xff]  }
  0x83   :  { %1456 = vmatprep.subr.bf16.mxu1 %v2378_v25  ;;  %v2457_v25 = vld [vmem:[#allocation4 + $0x2c8] ss:$16 sps:$4 sm:$0xff]   ;;  %v2462_v26 = vld [vmem:[#allocation4 + $0x4ec] ss:$16 sps:$4 sm:$0xff]  }
  0x85   :  { %1379 = vmatpush1.bf16.msra.mxu0 %v2379_v28  ;;  %v2460_v28 = vld [vmem:[#allocation4 + $0x4e8] ss:$16 sps:$4 sm:$0xff]  }
  0x86   :  { %1457 = vmatpush1.bf16.msra.mxu1 %v2376_v27  ;;  %1380 = vmatprep.subr.bf16.mxu0 %v2387_v30  ;;  %v2465_v27 = vld [vmem:[#allocation4 + $0x2ac] ss:$16 sps:$4 sm:$0xff]  }
  0x87   :  { %1458 = vmatprep.subr.bf16.mxu1 %v2384_v29  ;;  %v2463_v29 = vld [vmem:[#allocation4 + $0x2a8] ss:$16 sps:$4 sm:$0xff]   ;;  %v2468_v30 = vld [vmem:[#allocation4 + $0x4cc] ss:$16 sps:$4 sm:$0xff]  }
  0x89   :  { %1381 = vmatpush1.bf16.msra.mxu0 %v2385_v32  ;;  %v2466_v32 = vld [vmem:[#allocation4 + $0x4c8] ss:$16 sps:$4 sm:$0xff]  }
  0x8a   :  { %1459 = vmatpush1.bf16.msra.mxu1 %v2382_v31  ;;  %1382 = vmatprep.subr.bf16.mxu0 %v2393_v34  ;;  %v2471_v31 = vld [vmem:[#allocation4 + $0x28c] ss:$16 sps:$4 sm:$0xff]  }
  0x8b   :  { %1460 = vmatprep.subr.bf16.mxu1 %v2390_v33  ;;  %v2469_v33 = vld [vmem:[#allocation4 + $0x288] ss:$16 sps:$4 sm:$0xff]   ;;  %v2474_v34 = vld [vmem:[#allocation4 + $0x4ac] ss:$16 sps:$4 sm:$0xff]  }
  0x8d   :  { %1383 = vmatpush1.bf16.msra.mxu0 %v2391_v38  ;;  %v2475_v38 = vld [vmem:[#allocation4 + $0x268] ss:$16 sps:$4 sm:$0xff]  }
  0x8e   :  { %1461 = vmatpush1.bf16.msra.mxu1 %v2388_v37  ;;  %1384 = vmatprep.subr.bf16.mxu0 %v2399_v40  ;;  %v2472_v37 = vld [vmem:[#allocation4 + $0x4a8] ss:$16 sps:$4 sm:$0xff]  }
  0x8f   :  { %1462 = vmatprep.subr.bf16.mxu1 %v2396_v39  ;;  %v2483_v39 = vld [vmem:[#allocation4 + $0x24c] ss:$16 sps:$4 sm:$0xff]   ;;  %v2478_v40 = vld [vmem:[#allocation4 + $0x488] ss:$16 sps:$4 sm:$0xff]  }
  0x91   :  { %1385 = vmatpush1.bf16.msra.mxu0 %v2397_v42  ;;  %v2486_v42 = vld [vmem:[#allocation4 + $0x46c] ss:$16 sps:$4 sm:$0xff]  }
  0x92   :  { %1463 = vmatpush1.bf16.msra.mxu1 %v2394_v41  ;;  %1386 = vmatprep.subr.bf16.mxu0 %v2405_v44  ;;  %v2481_v41 = vld [vmem:[#allocation4 + $0x248] ss:$16 sps:$4 sm:$0xff]  }
  0x93   :  { %1464 = vmatprep.subr.bf16.mxu1 %v2402_v43  ;;  %v2484_v43 = vld [vmem:[#allocation4 + $0x468] ss:$16 sps:$4 sm:$0xff]  }
  0x94   :  { %v2487_v44 = vld [vmem:[#allocation4 + $0x228] ss:$16 sps:$4 sm:$0xff]  }
  0x95   :  { %1387 = vmatpush2.bf16.msra.mxu0 %v2403_v46  ;;  %v2495_v46 = vld [vmem:[#allocation4 + $0x20c] ss:$16 sps:$4 sm:$0xff]  }
  0x96   :  { %1465 = vmatpush1.bf16.msra.mxu1 %v2400_v45  ;;  %1388 = vmatprep.subr.bf16.mxu0 %v2411_v48  ;;  %v2492_v45 = vld [vmem:[#allocation4 + $0x44c] ss:$16 sps:$4 sm:$0xff]  }
  0x97   :  { %1466 = vmatprep.subr.bf16.mxu1 %v2408_v47  ;;  %v2493_v47 = vld [vmem:[#allocation4 + $0x208] ss:$16 sps:$4 sm:$0xff]   ;;  %v2498_v48 = vld [vmem:[#allocation4 + $0x42c] ss:$16 sps:$4 sm:$0xff]  }
  0x99   :  { %1389 = vmatpush2.bf16.msra.mxu0 %v2409_v50  ;;  %v2496_v50 = vld [vmem:[#allocation4 + $0x428] ss:$16 sps:$4 sm:$0xff]  }
  0x9a   :  { %1467 = vmatpush1.bf16.msra.mxu1 %v2406_v49  ;;  %1390 = vmatprep.subr.bf16.mxu0 %v2417_v53  ;;  %v2501_v49 = vld [vmem:[#allocation4 + $0x3ec] ss:$16 sps:$4 sm:$0xff]  }
  0x9b   :  { %1468 = vmatprep.subr.bf16.mxu1 %v2414_v51  ;;  %v2499_v51 = vld [vmem:[#allocation4 + $0x3e8] ss:$16 sps:$4 sm:$0xff]   ;;  %v2504_v53 = vld [vmem:[#allocation4 + $0x40c] ss:$16 sps:$4 sm:$0xff]  }
  0x9d   :  { %1391 = vmatpush2.bf16.msra.mxu0 %v2415_v55  ;;  %v2502_v55 = vld [vmem:[#allocation4 + $0x408] ss:$16 sps:$4 sm:$0xff]  }
  0x9e   :  { %1469 = vmatpush2.bf16.msra.mxu1 %v2412_v54  ;;  %1392 = vmatprep.subr.bf16.mxu0 %v2423_v57  ;;  %v2507_v54 = vld [vmem:[#allocation4 + $0x3cc] ss:$16 sps:$4 sm:$0xff]  }
  0x9f   :  { %1470 = vmatprep.subr.bf16.mxu1 %v2420_v56  ;;  %v2505_v56 = vld [vmem:[#allocation4 + $0x3c8] ss:$16 sps:$4 sm:$0xff]   ;;  %v2510_v57 = vld [vmem:[#allocation4 + $0x5ec] ss:$16 sps:$4 sm:$0xff]  }
  0xa1   :  { %1393 = vmatpush2.bf16.msra.mxu0 %v2421_v59  ;;  %v2508_v59 = vld [vmem:[#allocation4 + $0x5e8] ss:$16 sps:$4 sm:$0xff]  }
  0xa2   :  { %1471 = vmatpush2.bf16.msra.mxu1 %v2418_v58  ;;  %1394 = vmatprep.subr.bf16.mxu0 %v2429_v61  ;;  %v2513_v58 = vld [vmem:[#allocation4 + $0x3ac] ss:$16 sps:$4 sm:$0xff]  }
  0xa3   :  { %1472 = vmatprep.subr.bf16.mxu1 %v2426_v60  ;;  %v2511_v60 = vld [vmem:[#allocation4 + $0x3a8] ss:$16 sps:$4 sm:$0xff]   ;;  %v2516_v61 = vld [vmem:[#allocation4 + $0x5cc] ss:$16 sps:$4 sm:$0xff]  }
  0xa5   :  { %1395 = vmatpush2.bf16.msra.mxu0 %v2427_v63  ;;  %v2514_v63 = vld [vmem:[#allocation4 + $0x5c8] ss:$16 sps:$4 sm:$0xff]  }
  0xa6   :  { %1473 = vmatpush2.bf16.msra.mxu1 %v2424_v62  ;;  %1396 = vmatprep.subr.bf16.mxu0 %v2435_v1  ;;  %v2519_v62 = vld [vmem:[#allocation4 + $0x38c] ss:$16 sps:$4 sm:$0xff]  }
  0xa7   :  { %1474 = vmatprep.subr.bf16.mxu1 %v2432_v0  ;;  %v2517_v0 = vld [vmem:[#allocation4 + $0x388] ss:$16 sps:$4 sm:$0xff]   ;;  %v2522_v1 = vld [vmem:[#allocation4 + $0x5ac] ss:$16 sps:$4 sm:$0xff]  }
  0xa9   :  { %1397 = vmatpush2.bf16.msra.mxu0 %v2433_v3  ;;  %v2520_v3 = vld [vmem:[#allocation4 + $0x5a8] ss:$16 sps:$4 sm:$0xff]  }
  0xaa   :  { %1475 = vmatpush2.bf16.msra.mxu1 %v2430_v2  ;;  %1398 = vmatprep.subr.bf16.mxu0 %v2441_v5  ;;  %v2525_v2 = vld [vmem:[#allocation4 + $0x36c] ss:$16 sps:$4 sm:$0xff]  }
  0xab   :  { %1476 = vmatprep.subr.bf16.mxu1 %v2438_v4  ;;  %v2523_v4 = vld [vmem:[#allocation4 + $0x368] ss:$16 sps:$4 sm:$0xff]   ;;  %v2528_v5 = vld [vmem:[#allocation4 + $0x58c] ss:$16 sps:$4 sm:$0xff]  }
  0xad   :  { %1399 = vmatpush2.bf16.msra.mxu0 %v2439_v7  ;;  %v2526_v7 = vld [vmem:[#allocation4 + $0x588] ss:$16 sps:$4 sm:$0xff]  }
  0xae   :  { %1477 = vmatpush2.bf16.msra.mxu1 %v2436_v6  ;;  %1400 = vmatprep.subr.bf16.mxu0 %v2447_v11  ;;  %v2531_v6 = vld [vmem:[#allocation4 + $0x34c] ss:$16 sps:$4 sm:$0xff]  }
  0xaf   :  { %1478 = vmatprep.subr.bf16.mxu1 %v2444_v10  ;;  %v2529_v10 = vld [vmem:[#allocation4 + $0x348] ss:$16 sps:$4 sm:$0xff]   ;;  %v2534_v11 = vld [vmem:[#allocation4 + $0x56c] ss:$16 sps:$4 sm:$0xff]  }
  0xb1   :  { %1401 = vmatpush2.bf16.msra.mxu0 %v2445_v13  ;;  %v2532_v13 = vld [vmem:[#allocation4 + $0x568] ss:$16 sps:$4 sm:$0xff]  }
  0xb2   :  { %1479 = vmatpush2.bf16.msra.mxu1 %v2442_v12  ;;  %1493 = vmatprep.subr.bf16.mxu0 %v2453_v17  ;;  %v2537_v12 = vld [vmem:[#allocation4 + $0x32c] ss:$16 sps:$4 sm:$0xff]  }
  0xb3   :  { %1480 = vmatprep.subr.bf16.mxu1 %v2450_v14  ;;  %v2535_v14 = vld [vmem:[#allocation4 + $0x328] ss:$16 sps:$4 sm:$0xff]   ;;  %v2543_v17 = vld [vmem:[#allocation4 + $0x30c] ss:$16 sps:$4 sm:$0xff]  }
  0xb4   :  { %1403 = vmatmul.mubr.bf16.vlgmr.msra.gmra.mxu0 %v2743_v20 }
  0xb5   :  { %1494 = vmatpush1.bf16.msra.mxu0 %v2451_v21  ;;  %1525 = vmatprep.mubr.bf16.mxu0 %v2724_v52  ;;  %v2480_v52 = vld [vmem:[#allocation4 + $0x48c] ss:$16 sps:$4 sm:$0xff]   ;;  %v2541_v21 = vld [vmem:[#allocation4 + $0x308] ss:$16 sps:$4 sm:$0xff]  }
  0xb6   :  { %1481 = vmatpush2.bf16.msra.mxu1 %v2448_v18  ;;  %1495 = vmatprep.subr.bf16.mxu0 %v2459_v23  ;;  %v2538_v18 = vld [vmem:[#allocation4 + $0x548] ss:$16 sps:$4 sm:$0xff]   ;;  %v2549_v23 = vld [vmem:[#allocation4 + $0x60c] ss:$16 sps:$4 sm:$0xff]  }
  0xb7   :  { %1482 = vmatprep.subr.bf16.mxu1 %v2456_v22  ;;  %v2546_v22 = vld [vmem:[#allocation4 + $0x52c] ss:$16 sps:$4 sm:$0xff]  }
  0xb9   :  { %1496 = vmatpush1.bf16.msra.mxu0 %v2457_v25  ;;  %v2547_v25 = vld [vmem:[#allocation4 + $0x608] ss:$16 sps:$4 sm:$0xff]  }
  0xba   :  { %1483 = vmatpush2.bf16.msra.mxu1 %v2454_v24  ;;  %1497 = vmatprep.subr.bf16.mxu0 %v2465_v27  ;;  %v2544_v24 = vld [vmem:[#allocation4 + $0x528] ss:$16 sps:$4 sm:$0xff]   ;;  %v2553_v27 = vld [vmem:[#allocation7 + $0x78] sm:$0xff]  }
  0xbb   :  { %1534 = vmatprep.subr.bf16.mxu1 %v2462_v26  ;;  %v2552_v26 = vld [vmem:[#allocation4 + $0x50c] ss:$16 sps:$4 sm:$0xff]  }
  0xbd   :  { %1485 = vmatmul.mubr.bf16.vlgmr.msra.gmra.mxu1 %v2728_v8  ;;  %1498 = vmatpush1.bf16.msra.mxu0 %v2463_v29  ;;  %v2489_v8 = vld [vmem:[#allocation4 + $0x22c] ss:$16 sps:$4 sm:$0xff]  }
  0xbe   :  { %1535 = vmatpush1.bf16.msra.mxu1 %v2460_v28  ;;  %1499 = vmatprep.subr.bf16.mxu0 %v2471_v31  ;;  %v2550_v28 = vld [vmem:[#allocation4 + $0x508] ss:$16 sps:$4 sm:$0xff]   ;;  %v2554_v29 = vld [vmem:[#allocation7 + $0x38] sm:$0xff]  }
  0xbf   :  { %1536 = vmatprep.subr.bf16.mxu1 %v2468_v30  ;;  %1566 = vmatprep.mubr.bf16.mxu1 %v2740_v36  ;;  %v2490_v36 = vld [vmem:[#allocation4 + $0x448] ss:$16 sps:$4 sm:$0xff]  }
  0xc0   :  { %v2555_v30 = vld [vmem:[#allocation7 + $0x70] sm:$0xff]  }
  0xc1   :  { %1500 = vmatpush1.bf16.msra.mxu0 %v2469_v33  ;;  %v2556_v31 = vld [vmem:[#allocation7 + $0x30] sm:$0xff]   ;;  %v2559_v33 = vld [vmem:[#allocation7 + $0x60] sm:$0xff]  }
  0xc2   :  { %1537 = vmatpush1.bf16.msra.mxu1 %v2466_v32  ;;  %1501 = vmatprep.subr.bf16.mxu0 %v2477_v35  ;;  %v2557_v32 = vld [vmem:[#allocation7 + $0x68] sm:$0xff]   ;;  %v2570_v35 = vld [vmem:[#allocation7 + $0xb8] sm:$0xff]  }
  0xc3   :  { %1538 = vmatprep.subr.bf16.mxu1 %v2474_v34  ;;  %v2569_v34 = vld [vmem:[#allocation7 + $0xf8] sm:$0xff]  }
  0xc5   :  { %1502 = vmatpush1.bf16.msra.mxu0 %v2475_v38  ;;  %v2572_v38 = vld [vmem:[#allocation7 + $0xb0] sm:$0xff]  }
  0xc6   :  { %1539 = vmatpush1.bf16.msra.mxu1 %v2472_v37  ;;  %1503 = vmatprep.subr.bf16.mxu0 %v2483_v39  ;;  %v2560_v37 = vld [vmem:[#allocation7 + $0x20] sm:$0xff]   ;;  %v2574_v39 = vld [vmem:[#allocation7 + $0xa8] sm:$0xff]  }
  0xc7   :  { %1540 = vmatprep.subr.bf16.mxu1 %v2480_v52  ;;  %v2562_v52 = vld [vmem:[#allocation7 + $0x18] sm:$0xff]  }
  0xc9   :  { %1504 = vmatpush1.bf16.msra.mxu0 %v2481_v41  ;;  %v2575_v41 = vld [vmem:[#allocation7 + $0xe0] sm:$0xff]  }
  0xca   :  { %1541 = vmatpush1.bf16.msra.mxu1 %v2478_v40  ;;  %1505 = vmatprep.subr.bf16.mxu0 %v2489_v8  ;;  %v2563_v40 = vld [vmem:[#allocation7 + $0x50] sm:$0xff]   ;;  %v2565_v8 = vld [vmem:[#allocation7 + $0x48] sm:$0xff]  }
  0xcb   :  { %1542 = vmatprep.subr.bf16.mxu1 %v2486_v42  ;;  %v2564_v42 = vld [vmem:[#allocation7 + $0x10] sm:$0xff]  }
  0xcd   :  { %1506 = vmatpush1.bf16.msra.mxu0 %v2487_v44  ;;  %v2567_v44 = vld [vmem:[#allocation7 + $0x40] sm:$0xff]  }
  0xce   :  { %1543 = vmatpush1.bf16.msra.mxu1 %v2484_v43  ;;  %1507 = vmatprep.subr.bf16.mxu0 %v2495_v46  ;;  %v2566_v43 = vld [vmem:[#allocation7 + $0x8] sm:$0xff]   ;;  %v2576_v46 = vld [vmem:[#allocation7 + $0xa0] sm:$0xff]  }
  0xcf   :  { %1544 = vmatprep.subr.bf16.mxu1 %v2492_v45  ;;  %v2568_v45 = vld [vmem:[#allocation7] sm:$0xff]  }
  0xd1   :  { %1508 = vmatpush1.bf16.msra.mxu0 %v2493_v47 }
  0xd2   :  { %1545 = vmatpush1.bf16.msra.mxu1 %v2490_v36  ;;  %1509 = vmatprep.subr.bf16.mxu0 %v2501_v49 }
  0xd3   :  { %1546 = vmatprep.subr.bf16.mxu1 %v2498_v48 }
  0xd5   :  { %1510 = vmatpush2.bf16.msra.mxu0 %v2499_v51  ;;  %v2578_v51 = vld [vmem:[#allocation7 + $0x98] sm:$0xff]  }
  0xd6   :  { %1547 = vmatpush1.bf16.msra.mxu1 %v2496_v50  ;;  %1511 = vmatprep.subr.bf16.mxu0 %v2507_v54  ;;  %v2577_v50 = vld [vmem:[#allocation7 + $0xd8] sm:$0xff]  }
  0xd7   :  { %1548 = vmatprep.subr.bf16.mxu1 %v2504_v53 }
  0xd9   :  { %1512 = vmatpush2.bf16.msra.mxu0 %v2505_v56 }
  0xda   :  { %1549 = vmatpush1.bf16.msra.mxu1 %v2502_v55  ;;  %1513 = vmatprep.subr.bf16.mxu0 %v2513_v58  ;;  %v2580_v58 = vld [vmem:[#allocation7 + $0x90] sm:$0xff]  }
  0xdb   :  { %1550 = vmatprep.subr.bf16.mxu1 %v2510_v57  ;;  %v2579_v57 = vld [vmem:[#allocation7 + $0xd0] sm:$0xff]  }
  0xdd   :  { %1514 = vmatpush2.bf16.msra.mxu0 %v2511_v60 }
  0xde   :  { %1551 = vmatpush2.bf16.msra.mxu1 %v2508_v59  ;;  %1515 = vmatprep.subr.bf16.mxu0 %v2519_v62  ;;  %v2582_v62 = vld [vmem:[#allocation7 + $0x88] sm:$0xff]  }
  0xdf   :  { %1552 = vmatprep.subr.bf16.mxu1 %v2516_v61  ;;  %v2581_v61 = vld [vmem:[#allocation7 + $0xc8] sm:$0xff]  }
  0xe1   :  { %1516 = vmatpush2.bf16.msra.mxu0 %v2517_v0 }
  0xe2   :  { %1553 = vmatpush2.bf16.msra.mxu1 %v2514_v63  ;;  %1517 = vmatprep.subr.bf16.mxu0 %v2525_v2  ;;  %v2584_v2 = vld [vmem:[#allocation7 + $0x80] sm:$0xff]  }
  0xe3   :  { %1554 = vmatprep.subr.bf16.mxu1 %v2522_v1  ;;  %v2583_v1 = vld [vmem:[#allocation7 + $0xc0] sm:$0xff]  }
  0xe5   :  { %1518 = vmatpush2.bf16.msra.mxu0 %v2523_v4 }
  0xe6   :  { %1555 = vmatpush2.bf16.msra.mxu1 %v2520_v3  ;;  %1519 = vmatprep.subr.bf16.mxu0 %v2531_v6  ;;  %v284_v3 = vlaneseq  ;;  %v282_v6 = vld [vmem:[#allocation6] sm:$0xf] }
  0xe7   :  { %1556 = vmatprep.subr.bf16.mxu1 %v2528_v5 }
  0xe8   :  { %v285_v4 = vshrl.u32 %v284_v3, 7 }
  0xe9   :  { %1520 = vmatpush2.bf16.msra.mxu0 %v2529_v10 }
  0xea   :  { %1557 = vmatpush2.bf16.msra.mxu1 %v2526_v7  ;;  %1521 = vmatprep.subr.bf16.mxu0 %v2537_v12  ;;  %v286_v5 = vsub.s32 0, %v285_v4  ;;  %v290_v7 = vsub.s32 1, %v285_v4 }
  0xeb   :  { %1558 = vmatprep.subr.bf16.mxu1 %v2534_v11 }
  0xec   :  { %v287_v10 = vrot.slane %v282_v6, %v286_v5  ;;  %v291_v11 = vrot.slane %v282_v6, %v290_v7 }
  0xed   :  { %1522 = vmatpush2.bf16.msra.mxu0 %v2535_v14 }
  0xee   :  { %1559 = vmatpush2.bf16.msra.mxu1 %v2532_v13  ;;  %1523 = vmatprep.subr.bf16.mxu0 %v2543_v17 }
  0xef   :  { %1560 = vmatprep.subr.bf16.mxu1 %v2540_v15 }
  0xf1   :  { %1524 = vmatpush2.bf16.msra.mxu0 %v2541_v21 }
  0xf2   :  { %1561 = vmatpush2.bf16.msra.mxu1 %v2538_v18  ;;  %1589 = vmatprep.subr.bf16.mxu0 %v2549_v23 }
  0xf3   :  { %1562 = vmatprep.subr.bf16.mxu1 %v2546_v22 }
  0xf4   :  { %1526 = vmatmul.mubr.bf16.vlgmr.msra.gmra.mxu0 %v2730_v9  ;;  %v2558_v9 = vld [vmem:[#allocation7 + $0x28] sm:$0xff]  }
  0xf5   :  { %1590 = vmatpush1.bf16.msra.mxu0 %v2547_v25  ;;  %1607 = vmatprep.mubr.bf16.mxu0 %v2679_v16  ;;  %v2571_v16 = vld [vmem:[#allocation7 + $0xf0] sm:$0xff]  }
  0xf6   :  { %1563 = vmatpush2.bf16.msra.mxu1 %v2544_v24  ;;  %2206 = vmatprep.subr.bf16.mxu0 %v2553_v27 }
  0xf7   :  { %1564 = vmatprep.subr.bf16.mxu1 %v2552_v26 }
  0xfa   :  { %1565 = vmatpush2.bf16.msra.mxu1 %v2550_v28 }
  0xfb   :  { %2228 = vmatprep.subr.bf16.mxu1 %v2569_v34  ;;  %v294_v34 = vsub.s32 2, %v285_v4 }
  0xfc   :  { %2172 = vmatmul.mubr.msk.bf16.vlgmr.msra.gmra.mxu0 %vm1284_vm0, %v2735_v19  ;;  %v2573_v19 = vld [vmem:[#allocation7 + $0xe8] sm:$0xff]  }
  0xfd   :  { %1567 = vmatmul.mubr.bf16.vlgmr.msra.gmra.mxu1 %v2743_v20  ;;  %2207 = vmatpush3.bf16.msra.mxu0 %v2554_v29  ;;  %v2561_v20 = vld [vmem:[#allocation7 + $0x58] sm:$0xff]  }
  0xfe   :  { %2208 = vmatprep.subr.bf16.mxu0 %v2555_v30  ;;  %2229 = vmatpush3.bf16.msra.mxu1 %v2570_v35  ;;  %v298_v35 = vsub.s32 3, %v285_v4 }
  0xff   :  { %2230 = vmatprep.subr.bf16.mxu1 %v2571_v16 }
 0x101   :  { %2209 = vmatpush3.bf16.msra.mxu0 %v2556_v31 }
 0x102   :  { %2210 = vmatprep.subr.bf16.mxu0 %v2557_v32  ;;  %2231 = vmatpush3.bf16.msra.mxu1 %v2572_v38 }
 0x103   :  { %2232 = vmatprep.subr.bf16.mxu1 %v2573_v19 }
 0x105   :  { %2211 = vmatpush3.bf16.msra.mxu0 %v2558_v9 }
 0x106   :  { %2212 = vmatprep.subr.bf16.mxu0 %v2559_v33  ;;  %2233 = vmatpush3.bf16.msra.mxu1 %v2574_v39 }
 0x107   :  { %2234 = vmatprep.subr.bf16.mxu1 %v2575_v41 }
 0x109   :  { %2213 = vmatpush3.bf16.msra.mxu0 %v2560_v37  ;;  %v295_v37 = vrot.slane %v282_v6, %v294_v34 }
 0x10a   :  { %2214 = vmatprep.subr.bf16.mxu0 %v2561_v20  ;;  %2235 = vmatpush3.bf16.msra.mxu1 %v2576_v46  ;;  %v299_v20 = vrot.slane %v282_v6, %v298_v35 }
 0x10b   :  { %2236 = vmatprep.subr.bf16.mxu1 %v2577_v50 }
 0x10d   :  { %2215 = vmatpush3.bf16.msra.mxu0 %v2562_v52 }
 0x10e   :  { %2216 = vmatprep.subr.bf16.mxu0 %v2563_v40  ;;  %2237 = vmatpush3.bf16.msra.mxu1 %v2578_v51 }
 0x10f   :  { %2238 = vmatprep.subr.bf16.mxu1 %v2579_v57 }
 0x111   :  { %2217 = vmatpush3.bf16.msra.mxu0 %v2564_v42 }
 0x112   :  { %2218 = vmatprep.subr.bf16.mxu0 %v2565_v8  ;;  %2239 = vmatpush3.bf16.msra.mxu1 %v2580_v58 }
 0x113   :  { %2240 = vmatprep.subr.bf16.mxu1 %v2581_v61 }
 0x115   :  { %2219 = vmatpush3.bf16.msra.mxu0 %v2566_v43 }
 0x116   :  { %2220 = vmatprep.subr.bf16.mxu0 %v2567_v44  ;;  %2241 = vmatpush3.bf16.msra.mxu1 %v2582_v62 }
 0x117   :  { %2242 = vmatprep.subr.bf16.mxu1 %v2583_v1 }
 0x119   :  { %2221 = vmatpush3.bf16.msra.mxu0 %v2568_v45 }
 0x11a   :  { %2243 = vmatpush3.bf16.msra.mxu1 %v2584_v2 }
 0x134   :  { %v1322_v36 = vpop.f32.mrf.mxu0 }
 0x135   :  { %v1363_v47 = vpop.f32.mrf.mxu1  ;;  %v1323_v12 = vadd.f32 %v1322_v36, %v287_v10 }
 0x136   :  { %v1324_v48 = vpop.f32.mrf.mxu0 }
 0x137   :  { %v1365_v49 = vpop.f32.mrf.mxu1  ;;  %v1325_v13 = vadd.f32 %v1324_v48, %v291_v11  ;;  %v1364_v14 = vadd.f32 %v1363_v47, %v1323_v12 }
 0x138   :  { %v1326_v53 = vpop.f32.mrf.mxu0 }
 0x139   :  { %v1367_v54 = vpop.f32.mrf.mxu1  ;;  %v1366_v17 = vadd.f32 %v1365_v49, %v1325_v13 }
 0x13a   :  { %v1327_v55 = vpop.f32.mrf.mxu0 }
 0x13b   :  { %v1368_v56 = vpop.f32.mrf.mxu1 }
 0x13d   :  { %v1445_v59 = vpop.f32.mrf.mxu1 }
 0x13f   :  { %v1447_v60 = vpop.f32.mrf.mxu1 }
 0x141   :  { %v1449_v63 = vpop.f32.mrf.mxu1 }
 0x142   :  { %v2173_v63 = vld [vmem:[%s2764_s4] ss:$0 sm:$0xff] }
 0x143   :  { %v1450_v0 = vpop.f32.mrf.mxu1 }
 0x174   :  { %v1404_v15 = vpop.f32.mrf.mxu0 }
 0x175   :  { %v1405_v18 = vadd.f32 %v1404_v15, %v1364_v14 }
 0x176   :  { %v1406_v21 = vpop.f32.mrf.mxu0 }
 0x177   :  { %v1446_v22 = vadd.f32 %v1445_v59, %v1405_v18  ;;  %v1407_v23 = vadd.f32 %v1406_v21, %v1366_v17 }
 0x178   :  { %v1408_v24 = vpop.f32.mrf.mxu0 }
 0x179   :  { %v1448_v25 = vadd.f32 %v1447_v60, %v1407_v23  ;;  %v1616_v26 = vmax.f32 %v1446_v22, 0.0 }
 0x17a   :  { %v1409_v27 = vpop.f32.mrf.mxu0 }
 0x17b   :  { %v1617_v28 = vmax.f32 %v1448_v25, 0.0  ;;  %v1620_v31 = vpack.c.bf16 %v1616_v26, %v1616_v26 }
 0x17d   :  { %v1486_v29 = vpop.f32.mrf.mxu1  ;;  %v1621_v30 = vpack.c.bf16 %v1617_v28, %v1617_v28 }
 0x17e   :  { %v1487_v52 = vadd.f32 %v1486_v29, %v295_v37 }
 0x17f   :  { %v1488_v32 = vpop.f32.mrf.mxu1  ;;  %1919 = vmatprep.mubr.bf16.mxu0 %v1621_v30 }
 0x180   :  { %1920 = vmatmul.mubr.bf16.vlgmr.msra.gmra.mxu0 %v1620_v31  ;;  %v1489_v40 = vadd.f32 %v1488_v32, %v299_v20 }
 0x181   :  { %v1490_v9 = vpop.f32.mrf.mxu1 }
 0x183   :  { %v1491_v33 = vpop.f32.mrf.mxu1 }
 0x1b4   :  { %v1527_v16 = vpop.f32.mrf.mxu0 }
 0x1b5   :  { %v1528_v41 = vadd.f32 %v1527_v16, %v1487_v52 }
 0x1b6   :  { %v1529_v38 = vpop.f32.mrf.mxu0 }
 0x1b7   :  { %v1530_v43 = vadd.f32 %v1529_v38, %v1489_v40 }
 0x1b8   :  { %v1531_v19 = vpop.f32.mrf.mxu0 }
 0x1ba   :  { %v1532_v39 = vpop.f32.mrf.mxu0 }
 0x1bc   :  { %v1609_v8 = vpop.f32.mrf.mxu0 }
 0x1bd   :  { %v1568_v42 = vpop.f32.mrf.mxu1 }
 0x1be   :  { %v1569_v44 = vadd.f32 %v1568_v42, %v1528_v41  ;;  %v1611_v46 = vpop.f32.mrf.mxu0 }
 0x1bf   :  { %v1570_v45 = vpop.f32.mrf.mxu1 }
 0x1c0   :  { %v1610_v36 = vadd.f32 %v1609_v8, %v1569_v44  ;;  %v1571_v47 = vadd.f32 %v1570_v45, %v1530_v43  ;;  %v1613_v49 = vpop.f32.mrf.mxu0 }
 0x1c1   :  { %v1572_v48 = vpop.f32.mrf.mxu1 }
 0x1c2   :  { %v1612_v50 = vadd.f32 %v1611_v46, %v1571_v47  ;;  %v1618_v51 = vmax.f32 %v1610_v36, 0.0  ;;  %v1614_v54 = vpop.f32.mrf.mxu0 }
 0x1c3   :  { %v1573_v53 = vpop.f32.mrf.mxu1 }
 0x1c4   :  { %v1619_v55 = vmax.f32 %v1612_v50, 0.0  ;;  %v1622_v57 = vpack.c.bf16 %v1618_v51, %v1618_v51 }
 0x1c6   :  { %v1623_v56 = vpack.c.bf16 %v1619_v55, %v1619_v55 }
 0x1c8   :  { %1959 = vmatprep.mubr.bf16.mxu1 %v1623_v56 }
 0x1c9   :  { %1960 = vmatmul.mubr.bf16.vlgmr.msra.gmra.mxu1 %v1622_v57 }
 0x240   :  { %v2222_v58 = vpop.f32.mrf.mxu0 }
 0x242   :  { %v2223_v59 = vpop.f32.mrf.mxu0 }
 0x243   :  { %v2224_v60 = vadd.f32 %v2223_v59, %v2222_v58 }
 0x244   :  { %v2225_v61 = vpop.f32.mrf.mxu0 }
 0x245   :  { %v1922_v2 = vadd.f32 %v2224_v60, %v2173_v63 }
 0x246   :  { %v2226_v62 = vpop.f32.mrf.mxu0 }
 0x289   :  { %v2244_v0 = vpop.f32.mrf.mxu1 }
 0x28b   :  { %v2245_v1 = vpop.f32.mrf.mxu1 }
 0x28c   :  { %v2246_v3 = vadd.f32 %v2245_v1, %v2244_v0 }
 0x28d   :  { %v2247_v4 = vpop.f32.mrf.mxu1 }
 0x28e   :  { %v1962_v5 = vadd.f32 %v2246_v3, %v1922_v2 }
 0x28f   :  { %v2248_v6 = vpop.f32.mrf.mxu1 }
 0x290   :  { %1967 = vst [vmem:[%s2765_s5] sm:$0xff] %v1962_v5 }
 0x291   :  { %1972 = vsyncpa [#allocation3], 1 }
 0x292   :  { %1973 = vsyncpa [#allocation5], 1 }
 0x293   :  { %1974 = vsyncpa [#allocation8], 1 }

</bundles_post_ra>
